<compile_context>
chip_gen: v5e
topology: v5e:2x2
jax: 0.10.0
libtpu: 0.0.40
codegen_flags: <defaults>
</compile_context>

<pallas_src>
import functools

import jax
import jax.numpy as jnp
from jax.experimental import pallas as pl
from jax.experimental.pallas import tpu as pltpu

_SUBLANE = 8              # f32 sublane count
_TB_MAX = 4096            # batch rows per grid step (multiple of 8 and 128)
_MIN_PALLAS_BATCH = 256   # below this, plain XLA fuses the tiny MLP for free


def _round_up(n, m):
    return ((n + m - 1) // m) * m


def policy_kernel(x_ref, w1_ref, b1_ref, w2_ref, b2_ref, o_ref):
    # (tb, 49) @ (49, H) -> relu(+b1) -> (tb, H) @ (H, A) -> +b2 -> clamp.
    # Both matmuls accumulate in f32 on the MXU; bias adds / relu / clamp run on
    # the VPU (free slack in this DMA-bound kernel).
    h = jnp.dot(x_ref[...], w1_ref[...], preferred_element_type=jnp.float32)
    h = jnp.maximum(h + b1_ref[...], 0.0)                       # ReLU(x@W1 + b1)
    o = jnp.dot(h.astype(w2_ref.dtype), w2_ref[...],
                preferred_element_type=jnp.float32)
    o = o + b2_ref[...]
    o_ref[...] = jnp.clip(o, -1000.0, 1000.0)                   # clamp(-1000, 1000)


@functools.partial(jax.jit, static_argnames=("compute_dtype", "min_pallas_batch"))
def policy_forward(x, w1, b1, w2, b2, *, compute_dtype=jnp.float32,
                   min_pallas_batch=_MIN_PALLAS_BATCH):
    obs, hidden = w1.shape
    act = w2.shape[1]

    # Reproduce `x.view(-1, 7*7)` from the PyTorch forward; single cast.
    x2d = x.reshape(-1, obs).astype(compute_dtype)
    batch = x2d.shape[0]

    # Tiny-batch fallback: custom-call launch + padding dwarfs a 49x32x4 MLP.
    if batch < min_pallas_batch:
        h = jnp.dot(x2d, w1.astype(compute_dtype),
                    preferred_element_type=jnp.float32) + b1
        h = jnp.maximum(h, 0.0)
        o = jnp.dot(h.astype(compute_dtype), w2.astype(compute_dtype),
                    preferred_element_type=jnp.float32) + b2
        return jnp.clip(o, -1000.0, 1000.0)

    # Batch tiling: tb multiple of 8 sublanes, capped at _TB_MAX rows per step.
    if batch >= _TB_MAX:
        tb = _TB_MAX
    else:
        tb = _round_up(batch, _SUBLANE)
    batch_p = _round_up(batch, tb)
    grid = (batch_p // tb,)

    # Only batch padding; lane dims stay at their natural widths (49 / H / A).
    if batch_p != batch:
        x_in = jnp.zeros((batch_p, obs), compute_dtype).at[:batch].set(x2d)
    else:
        x_in = x2d

    w1_c = w1.astype(compute_dtype)
    w2_c = w2.astype(compute_dtype)
    b1_r = b1.reshape(1, hidden).astype(jnp.float32)
    b2_r = b2.reshape(1, act).astype(jnp.float32)

    itemsize = jnp.dtype(compute_dtype).itemsize
    cost = pl.CostEstimate(
        flops=2 * batch_p * (obs * hidden + hidden * act),
        transcendentals=0,
        bytes_accessed=(batch_p * obs + obs * hidden + hidden * act) * itemsize
        + (hidden + act) * 4              # biases
        + batch_p * act * 4,              # output
    )

    out_pad = pl.pallas_call(
        policy_kernel,
        out_shape=jax.ShapeDtypeStruct((batch_p, act), jnp.float32),
        grid=grid,
        in_specs=[
            pl.BlockSpec((tb, obs), lambda i: (i, 0)),        # x: compact, pipelined
            pl.BlockSpec((obs, hidden), lambda i: (0, 0)),    # w1: VMEM-resident
            pl.BlockSpec((1, hidden), lambda i: (0, 0)),      # b1: VMEM-resident
            pl.BlockSpec((hidden, act), lambda i: (0, 0)),    # w2: VMEM-resident
            pl.BlockSpec((1, act), lambda i: (0, 0)),         # b2: VMEM-resident
        ],
        out_specs=pl.BlockSpec((tb, act), lambda i: (i, 0)),  # compact output
        compiler_params=pltpu.CompilerParams(
            dimension_semantics=("parallel",),       # shard batch across v7x TCs
            vmem_limit_bytes=32 * 1024 * 1024,       # headroom on v5e's 16 MiB default
        ),
        cost_estimate=cost,
    )(x_in, w1_c, b1_r, w2_c, b2_r)

    # Strip batch padding only (lane dim is already the real act width).
    return out_pad[:batch]


def init_policy_params(key, obs_size, act_size, inner_size):
    """Deterministic init mimicking nn.Linear's U(-1/sqrt(fan_in), 1/sqrt(fan_in)).

    Weights are stored as [in_features, out_features] (transpose of PyTorch's
    nn.Linear layout) so the kernel computes plain x @ W.
    """
    k1, k2, k3, k4 = jax.random.split(key, 4)
    bound1 = 1.0 / jnp.sqrt(jnp.float32(obs_size))
    bound2 = 1.0 / jnp.sqrt(jnp.float32(inner_size))
    w1 = jax.random.uniform(k1, (obs_size, inner_size), jnp.float32, -bound1, bound1)
    b1 = jax.random.uniform(k2, (inner_size,), jnp.float32, -bound1, bound1)
    w2 = jax.random.uniform(k3, (inner_size, act_size), jnp.float32, -bound2, bound2)
    b2 = jax.random.uniform(k4, (act_size,), jnp.float32, -bound2, bound2)
    return w1, b1, w2, b2


if __name__ == "__main__":
    obs_size = 7 * 7      # forward hard-codes x.view(-1, 7*7)
    inner_size = 32
    act_size = 4

    key = jax.random.PRNGKey(0)
    k_x1, k_x2, k_p = jax.random.split(key, 3)
    w1, b1, w2, b2 = init_policy_params(k_p, obs_size, act_size, inner_size)

    def reference(x):
        x2d = x.reshape(-1, obs_size)
        return jnp.clip(jnp.maximum(x2d @ w1 + b1, 0.0) @ w2 + b2, -1000.0, 1000.0)

    # 1) Small batch, forced through the Pallas kernel (single 8-row tile).
    x_small = jax.random.normal(k_x1, (8, 7, 7), dtype=jnp.float32)
    out_small = jax.block_until_ready(
        policy_forward(x_small, w1, b1, w2, b2, min_pallas_batch=0))
    assert out_small.shape == (8, act_size)
    assert jnp.allclose(out_small, reference(x_small), atol=1e-4, rtol=1e-4)

    # 2) Same small batch through the XLA fallback (default threshold).
    out_fb = jax.block_until_ready(policy_forward(x_small, w1, b1, w2, b2))
    assert jnp.allclose(out_fb, reference(x_small), atol=1e-4, rtol=1e-4)

    # 3) Larger batch exercising the multi-step grid + batch padding.
    x_big = jax.random.normal(k_x2, (4100, 7, 7), dtype=jnp.float32)
    out_big = jax.block_until_ready(policy_forward(x_big, w1, b1, w2, b2))
    assert out_big.shape == (4100, act_size)
    assert jnp.allclose(out_big, reference(x_big), atol=1e-4, rtol=1e-4)

    print("KERNEL_OK")
</pallas_src>

<mosaic_0001>
module attributes {stable_mosaic.version = 11 : i64} {
  func.func @policy_kernel(%arg0: i32, %arg1: memref<8x49xf32, #tpu.memory_space<vmem>>, %arg2: memref<49x32xf32, #tpu.memory_space<vmem>>, %arg3: memref<1x32xf32, #tpu.memory_space<vmem>>, %arg4: memref<32x4xf32, #tpu.memory_space<vmem>>, %arg5: memref<1x4xf32, #tpu.memory_space<vmem>>, %arg6: memref<8x4xf32, #tpu.memory_space<vmem>>) attributes {dimension_semantics = [#tpu.dimension_semantics<parallel>], iteration_bounds = array<i64: 1>, scalar_prefetch = 0 : i64, scratch_operands = 0 : i64, tpu.core_type = #tpu.core_type<tc>, window_params = [{transform_indices = @transform_0, window_bounds = array<i64: 8, 49>}, {pipeline_mode = #tpu.pipeline_mode<synchronous>, transform_indices = @transform_1, window_bounds = array<i64: 49, 32>}, {pipeline_mode = #tpu.pipeline_mode<synchronous>, transform_indices = @transform_2, window_bounds = array<i64: 1, 32>}, {pipeline_mode = #tpu.pipeline_mode<synchronous>, transform_indices = @transform_3, window_bounds = array<i64: 32, 4>}, {pipeline_mode = #tpu.pipeline_mode<synchronous>, transform_indices = @transform_4, window_bounds = array<i64: 1, 4>}, {transform_indices = @transform_5, window_bounds = array<i64: 8, 4>}]} {
    %c0 = arith.constant 0 : index
    %c0_0 = arith.constant 0 : index
    %0 = vector.load %arg1[%c0, %c0_0] : memref<8x49xf32, #tpu.memory_space<vmem>>, vector<8x49xf32>
    %c0_1 = arith.constant 0 : index
    %c0_2 = arith.constant 0 : index
    %1 = vector.load %arg2[%c0_1, %c0_2] : memref<49x32xf32, #tpu.memory_space<vmem>>, vector<49x32xf32>
    %cst = arith.constant dense<0.000000e+00> : vector<8x32xf32>
    %2 = tpu.matmul %0, %1, %cst {dimension_numbers = #tpu.dot_dimension_numbers<[1], [0], [0], [1], [0, 0, 1, 1], [], []>} : vector<8x49xf32>, vector<49x32xf32>, vector<8x32xf32> -> vector<8x32xf32>
    %c0_3 = arith.constant 0 : index
    %c0_4 = arith.constant 0 : index
    %3 = vector.load %arg3[%c0_3, %c0_4] : memref<1x32xf32, #tpu.memory_space<vmem>>, vector<1x32xf32>
    %4 = vector.broadcast %3 : vector<1x32xf32> to vector<8x32xf32>
    %5 = arith.addf %2, %4 : vector<8x32xf32>
    %cst_5 = arith.constant 0.000000e+00 : f32
    %6 = vector.broadcast %cst_5 : f32 to vector<8x32xf32>
    %7 = arith.maximumf %5, %6 : vector<8x32xf32>
    %c0_6 = arith.constant 0 : index
    %c0_7 = arith.constant 0 : index
    %8 = vector.load %arg4[%c0_6, %c0_7] : memref<32x4xf32, #tpu.memory_space<vmem>>, vector<32x4xf32>
    %cst_8 = arith.constant dense<0.000000e+00> : vector<8x4xf32>
    %9 = tpu.matmul %7, %8, %cst_8 {dimension_numbers = #tpu.dot_dimension_numbers<[1], [0], [0], [1], [0, 0, 1, 1], [], []>} : vector<8x32xf32>, vector<32x4xf32>, vector<8x4xf32> -> vector<8x4xf32>
    %c0_9 = arith.constant 0 : index
    %c0_10 = arith.constant 0 : index
    %10 = vector.load %arg5[%c0_9, %c0_10] : memref<1x4xf32, #tpu.memory_space<vmem>>, vector<1x4xf32>
    %11 = vector.broadcast %10 : vector<1x4xf32> to vector<8x4xf32>
    %12 = arith.addf %9, %11 : vector<8x4xf32>
    %cst_11 = arith.constant -1.000000e+03 : f32
    %cst_12 = arith.constant 1.000000e+03 : f32
    %13 = vector.broadcast %cst_11 : f32 to vector<8x4xf32>
    %14 = arith.maximumf %13, %12 : vector<8x4xf32>
    %15 = vector.broadcast %cst_12 : f32 to vector<8x4xf32>
    %16 = arith.minimumf %15, %14 : vector<8x4xf32>
    %c0_13 = arith.constant 0 : index
    %c0_14 = arith.constant 0 : index
    %17 = vector.load %arg6[%c0_13, %c0_14] : memref<8x4xf32, #tpu.memory_space<vmem>>, vector<8x4xf32>
    tpu.vector_store %arg6[%c0_13, %c0_14], %16 {strides = array<i32>} : memref<8x4xf32, #tpu.memory_space<vmem>>, vector<8x4xf32>,
    return
  }
  func.func @transform_0(%arg0: i32) -> (i32, i32) {
    %c0_i32 = arith.constant 0 : i32
    %c0_i32_0 = arith.constant 0 : i32
    return %arg0, %c0_i32 : i32, i32
  }
  func.func @transform_1(%arg0: i32) -> (i32, i32) {
    %c0_i32 = arith.constant 0 : i32
    %c0_i32_0 = arith.constant 0 : i32
    %c0_i32_1 = arith.constant 0 : i32
    return %c0_i32, %c0_i32_0 : i32, i32
  }
  func.func @transform_2(%arg0: i32) -> (i32, i32) {
    %c0_i32 = arith.constant 0 : i32
    %c0_i32_0 = arith.constant 0 : i32
    %c0_i32_1 = arith.constant 0 : i32
    return %c0_i32, %c0_i32_0 : i32, i32
  }
  func.func @transform_3(%arg0: i32) -> (i32, i32) {
    %c0_i32 = arith.constant 0 : i32
    %c0_i32_0 = arith.constant 0 : i32
    %c0_i32_1 = arith.constant 0 : i32
    return %c0_i32, %c0_i32_0 : i32, i32
  }
  func.func @transform_4(%arg0: i32) -> (i32, i32) {
    %c0_i32 = arith.constant 0 : i32
    %c0_i32_0 = arith.constant 0 : i32
    %c0_i32_1 = arith.constant 0 : i32
    return %c0_i32, %c0_i32_0 : i32, i32
  }
  func.func @transform_5(%arg0: i32) -> (i32, i32) {
    %c0_i32 = arith.constant 0 : i32
    %c0_i32_0 = arith.constant 0 : i32
    return %arg0, %c0_i32 : i32, i32
  }
}

</mosaic_0001>

<bundles_post_ra>
// kernel: policy_forward.1
= control target key start
LH: loop header
LB: loop body
LE: loop exit
PB: predicated region body
PF: predicated region fallthrough
CT: control target
= control target key end

     0   :  { %vm36_vm0 = vcmask 1040384   ;;  %vm32_vm1 = vcmask 400384   ;;  %vm69_vm2 = vcmask 261120   ;;  %vm95_vm3 = vcmask 31744   ;;  %s182_s1 = inlined_call_operand.vmem [shape: f32[49,32], index: 1, kind: input, shape index: {}]   ;;  %s183_s3 = inlined_call_operand.vmem [shape: f32[32,4], index: 3, kind: input, shape index: {}]   ;;  %s184_s2 = inlined_call_operand.vmem [shape: f32[1,32], index: 2, kind: input, shape index: {}]   ;;  %s185_s0 = inlined_call_operand.vmem [shape: f32[8,49], index: 0, kind: input, shape index: {}]   ;;  %s186_s4 = inlined_call_operand.vmem [shape: f32[1,4], index: 4, kind: input, shape index: {}]   ;;  %s187_s5 = inlined_call_operand.vmem [shape: f32[8,4], index: 5, kind: output, shape index: {}]  }
   0x1   :  { %v27_v0 = vld [vmem:[%s182_s1 + $0x30] sm:$0x1]  ;;  %v26_v1 = vld [vmem:[%s182_s1 + $0x28] sm:$0xff]  ;;  %v25_v2 = vld [vmem:[%s182_s1 + $0x20] sm:$0xff] }
   0x2   :  { %101 = vmatpush.msk.msra.mxu0 %vm36_vm0, %v27_v0  ;;  %v64_v3 = vld [vmem:[%s183_s3 + $0x18] sm:$0xff]  ;;  %v23_v5 = vld [vmem:[%s182_s1 + $0x10] sm:$0xff]  ;;  %v22_v6 = vld [vmem:[%s182_s1 + $0x8] sm:$0xff] }
   0x3   :  { %85 = vmatpush.msra.mxu1 %v64_v3  ;;  %v24_v4 = vld [vmem:[%s182_s1 + $0x18] sm:$0xff]  ;;  %v21_v7 = vld [vmem:[%s182_s1] sm:$0xff]  ;;  %v63_v9 = vld [vmem:[%s183_s3 + $0x10] sm:$0xff] }
   0x4   :  { %50 = vmatpush.msra.mxu0 %v26_v1  ;;  %v20_v8 = vld [vmem:[%s185_s0] sm:$0xff]  ;;  %v62_v10 = vld [vmem:[%s183_s3 + $0x8] sm:$0xff] }
   0x5   :  { %86 = vmatpush.msra.mxu1 %v63_v9  ;;  %v61_v11 = vld [vmem:[%s183_s3] sm:$0xff] }
   0x6   :  { %51 = vmatpush.msra.mxu0 %v25_v2  ;;  %v105_v12 = vld [vmem:[%s184_s2] ss:$0 sm:$0xff] }
   0x7   :  { %87 = vmatpush.msra.mxu1 %v62_v10  ;;  %v106_v16 = vld [vmem:[%s186_s4] ss:$0 sm:$0xff] }
   0x8   :  { %52 = vmatpush.msra.mxu0 %v24_v4 }
   0x9   :  { %88 = vmatpush.msra.mxu1 %v61_v11 }
   0xa   :  { %53 = vmatpush.msra.mxu0 %v23_v5 }
   0xc   :  { %54 = vmatpush.msra.mxu0 %v22_v6 }
   0xe   :  { %55 = vmatpush.msra.mxu0 %v21_v7 }
   0xf   :  { %102 = vmatmul.msk.f32.vlgmr.msra.gmra.mxu0 %vm32_vm1, %v20_v8 }
  0x8c   :  { %v57_v13 = vpop.f32.mrf.mxu0 }
  0x8d   :  { %v58_v14 = vadd.f32 %v105_v12, %v57_v13 }
  0x8f   :  { %v60_v15 = vmax.f32 %v58_v14, 0.0 }
  0x91   :  { %103 = vmatmul.msk.f32.vlgmr.msra.gmra.mxu1 %vm69_vm2, %v60_v15 }
 0x10e   :  { %v90_v17 = vpop.f32.mrf.mxu1 }
 0x10f   :  { %v91_v18 = vadd.f32 %v106_v16, %v90_v17 }
 0x111   :  { %v104_v19 = vclamps-f32 %v91_v18, 1000.0 }
 0x113   :  { %96 = vst.msk [vmem:[%s187_s5] sm:$0xff] %vm95_vm3, %v104_v19 }

</bundles_post_ra>
